<compile_context>
chip_gen: v5e
topology: v5e:2x2
jax: 0.10.0
libtpu: 0.0.40
codegen_flags: <defaults>
</compile_context>

<pallas_src>
import functools

import numpy as np
import jax
import jax.numpy as jnp
from jax import lax
from jax.experimental import pallas as pl
from jax.experimental.pallas import tpu as pltpu

LANE = 128  # lane width: keep all Pallas output channel dims a multiple of this


def _round_up(x, m):
    return (x + m - 1) // m * m


# ---------------------------------------------------------------------------
# Kernel 1: fused GEMM + bias + optional ReLU  (used for conv1 / conv2 / shortcut)
# ---------------------------------------------------------------------------
def _gemm_bias_act_kernel(x_ref, w_ref, b_ref, o_ref, *, apply_relu):
    acc = jnp.dot(x_ref[...], w_ref[...], preferred_element_type=jnp.float32)
    acc = acc + b_ref[...]                       # (1, Np) broadcast over rows
    if apply_relu:
        acc = jnp.maximum(acc, 0.0)
    o_ref[...] = acc


def _gemm_bias_act(x, w, b, *, apply_relu, tile_m=256):
    """out = act(x @ w + b).  x:(M,K), w:(K,Np), b:(1,Np); Np lane-dense (x128)."""
    M, K = x.shape
    Kw, Np = w.shape
    assert K == Kw and b.shape == (1, Np)
    # Row tile: big enough to amortize per-step overhead, small enough that
    # 2x double-buffered input tiles stay far below v7x's 64 MiB VMEM.
    tm = min(tile_m, _round_up(M, 8))
    Mp = _round_up(M, tm)
    if Mp != M:
        x = jnp.pad(x, ((0, Mp - M), (0, 0)))
    cost = pl.CostEstimate(
        flops=2 * Mp * K * Np,
        transcendentals=0,
        bytes_accessed=4 * (Mp * K + K * Np + Mp * Np),
    )
    out = pl.pallas_call(
        functools.partial(_gemm_bias_act_kernel, apply_relu=apply_relu),
        out_shape=jax.ShapeDtypeStruct((Mp, Np), jnp.float32),
        grid=(Mp // tm,),
        in_specs=[
            pl.BlockSpec((tm, K), lambda i: (i, 0)),   # pipelined row tile of x
            pl.BlockSpec((K, Np), lambda i: (0, 0)),   # weights resident in VMEM
            pl.BlockSpec((1, Np), lambda i: (0, 0)),   # folded BN bias resident
        ],
        out_specs=pl.BlockSpec((tm, Np), lambda i: (i, 0)),
        compiler_params=pltpu.CompilerParams(dimension_semantics=("parallel",)),
        cost_estimate=cost,
    )(x, w, b)
    return out[:M]


# ---------------------------------------------------------------------------
# Kernel 2: fused squeeze + excitation MLP + scale + shortcut add + ReLU
# (one grid point per batch sample)
# ---------------------------------------------------------------------------
def _se_combine_kernel(res_ref, sc_ref, w1_ref, b1_ref, w2_ref, b2_ref, o_ref):
    res = res_ref[...]                                    # (HW, Cp)
    # Squeeze: global average pool over the spatial axis (XLU reduce).
    sq = jnp.mean(res, axis=0, keepdims=True)             # (1, Cp)
    # Excitation MLP: Linear -> ReLU -> Linear -> Sigmoid.
    h = jnp.dot(sq, w1_ref[...], preferred_element_type=jnp.float32) + b1_ref[...]
    h = jnp.maximum(h, 0.0)
    z = jnp.dot(h, w2_ref[...], preferred_element_type=jnp.float32) + b2_ref[...]
    e = 1.0 / (1.0 + jnp.exp(-z))                         # sigmoid, (1, Cp)
    # residual * excitation + shortcut, final ReLU.
    o_ref[...] = jnp.maximum(res * e + sc_ref[...], 0.0)


def _se_combine(residual, shortcut, w1, b1, w2, b2):
    """residual/shortcut: (N, HW, Cp) -> out (N, HW, Cp)."""
    N, HW, Cp = residual.shape
    Hh = w1.shape[1]
    # TODO(synk): for very large H*W per sample, split into a squeeze pass and a
    # combine pass with spatial tiling instead of one full-sample block.
    return pl.pallas_call(
        _se_combine_kernel,
        out_shape=jax.ShapeDtypeStruct((N, HW, Cp), jnp.float32),
        grid=(N,),
        in_specs=[
            pl.BlockSpec((None, HW, Cp), lambda n: (n, 0, 0)),
            pl.BlockSpec((None, HW, Cp), lambda n: (n, 0, 0)),
            pl.BlockSpec((Cp, Hh), lambda n: (0, 0)),
            pl.BlockSpec((1, Hh), lambda n: (0, 0)),
            pl.BlockSpec((Hh, Cp), lambda n: (0, 0)),
            pl.BlockSpec((1, Cp), lambda n: (0, 0)),
        ],
        out_specs=pl.BlockSpec((None, HW, Cp), lambda n: (n, 0, 0)),
        compiler_params=pltpu.CompilerParams(dimension_semantics=("parallel",)),
    )(residual, shortcut, w1, b1, w2, b2)


# ---------------------------------------------------------------------------
# Wrapper: parameter folding, im2col, layout plumbing
# ---------------------------------------------------------------------------
def _fold_bn(w, b, gamma, beta, mean, var, eps=1e-5):
    """Fold inference-mode BatchNorm into a conv weight (HWIO) and bias."""
    scale = gamma / jnp.sqrt(var + eps)
    return w * scale, (b - mean) * scale + beta


def _pad_last(a, target):
    pad = target - a.shape[-1]
    return a if pad == 0 else jnp.pad(a, [(0, 0)] * (a.ndim - 1) + [(0, pad)])


def _im2col(x_nhwc, ksize, stride):
    """x already spatially padded. Returns (N*Ho*Wo, k*k*C) patches and (N,Ho,Wo)."""
    N, H, W, C = x_nhwc.shape
    Ho = (H - ksize) // stride + 1
    Wo = (W - ksize) // stride + 1
    taps = []
    for dh in range(ksize):
        for dw in range(ksize):
            taps.append(x_nhwc[:, dh:dh + stride * Ho:stride,
                               dw:dw + stride * Wo:stride, :])
    patches = jnp.stack(taps, axis=3)                     # (N, Ho, Wo, k*k, C)
    return patches.reshape(N * Ho * Wo, ksize * ksize * C), (N, Ho, Wo)


def basic_residual_se_block_forward(x_nchw, params, stride):
    """Forward of BasicResidualSEBlock (expansion=1, eval-mode BatchNorm)."""
    p = params
    N, Cin, H, W = x_nchw.shape
    Cout = p["conv1_w"].shape[-1]
    Cp = _round_up(Cout, LANE)              # lane-dense channel width in-block
    x = jnp.transpose(x_nchw, (0, 2, 3, 1)).astype(jnp.float32)      # NHWC

    # Fold eval-mode BatchNorm into the conv weights/biases (parameter prep).
    w1, b1 = _fold_bn(p["conv1_w"], p["conv1_b"],
                      p["bn1_g"], p["bn1_b"], p["bn1_m"], p["bn1_v"])
    w2, b2 = _fold_bn(p["conv2_w"], p["conv2_b"],
                      p["bn2_g"], p["bn2_b"], p["bn2_m"], p["bn2_v"])

    # ---- residual branch: conv3x3(stride)+BN+ReLU, conv3x3+BN+ReLU ----------
    # TODO(synk): im2col is done in XLA; it could be folded into the GEMM kernel
    # as 9 shifted matmuls to avoid the 9x patch materialization at large shapes.
    xp = jnp.pad(x, ((0, 0), (1, 1), (1, 1), (0, 0)))
    patches1, (_, Ho, Wo) = _im2col(xp, 3, stride)
    y1 = _gemm_bias_act(patches1,
                        _pad_last(w1.reshape(9 * Cin, Cout), Cp),
                        _pad_last(b1.reshape(1, Cout), Cp),
                        apply_relu=True)                 # (N*Ho*Wo, Cp)
    y1 = y1.reshape(N, Ho, Wo, Cp)[..., :Cout]           # drop lane pad for im2col

    y1p = jnp.pad(y1, ((0, 0), (1, 1), (1, 1), (0, 0)))
    patches2, _ = _im2col(y1p, 3, 1)
    residual = _gemm_bias_act(patches2,
                              _pad_last(w2.reshape(9 * Cout, Cout), Cp),
                              _pad_last(b2.reshape(1, Cout), Cp),
                              apply_relu=True).reshape(N, Ho, Wo, Cp)

    # ---- shortcut branch -----------------------------------------------------
    if stride != 1 or Cin != Cout:
        ws, bs = _fold_bn(p["sc_w"], p["sc_b"],
                          p["bns_g"], p["bns_b"], p["bns_m"], p["bns_v"])
        xs = x[:, ::stride, ::stride, :].reshape(N * Ho * Wo, Cin)
        shortcut = _gemm_bias_act(xs,
                                  _pad_last(ws.reshape(Cin, Cout), Cp),
                                  _pad_last(bs.reshape(1, Cout), Cp),
                                  apply_relu=False).reshape(N, Ho, Wo, Cp)
    else:
        shortcut = _pad_last(x, Cp)

    # ---- squeeze-excitation + combine (fused per-sample Pallas kernel) -------
    hidden = p["fc1_w"].shape[-1]
    Hp = _round_up(hidden, LANE)
    fc1_w = jnp.pad(p["fc1_w"], ((0, Cp - Cout), (0, Hp - hidden)))
    fc1_b = _pad_last(p["fc1_b"].reshape(1, hidden), Hp)
    fc2_w = jnp.pad(p["fc2_w"], ((0, Hp - hidden), (0, Cp - Cout)))
    fc2_b = _pad_last(p["fc2_b"].reshape(1, Cout), Cp)

    out = _se_combine(residual.reshape(N, Ho * Wo, Cp),
                      shortcut.reshape(N, Ho * Wo, Cp),
                      fc1_w, fc1_b, fc2_w, fc2_b)
    out = out.reshape(N, Ho, Wo, Cp)[..., :Cout]         # strip lane padding
    return jnp.transpose(out, (0, 3, 1, 2))              # back to NCHW


# ---------------------------------------------------------------------------
# Pure-JAX (XLA) reference of the same forward pass, for correctness checking
# ---------------------------------------------------------------------------
def _reference_forward(x_nchw, params, stride, eps=1e-5):
    p = params
    hi = lax.Precision.HIGHEST

    def conv(x, w_hwio, b, s, pad):
        dn = lax.conv_dimension_numbers(x.shape, w_hwio.shape,
                                        ("NCHW", "HWIO", "NCHW"))
        y = lax.conv_general_dilated(x, w_hwio, (s, s), pad,
                                     dimension_numbers=dn, precision=hi)
        return y + b[None, :, None, None]

    def bn(x, g, b, m, v):
        return (x - m[None, :, None, None]) / jnp.sqrt(v[None, :, None, None] + eps) \
            * g[None, :, None, None] + b[None, :, None, None]

    res = jax.nn.relu(bn(conv(x_nchw, p["conv1_w"], p["conv1_b"], stride,
                              ((1, 1), (1, 1))),
                         p["bn1_g"], p["bn1_b"], p["bn1_m"], p["bn1_v"]))
    res = jax.nn.relu(bn(conv(res, p["conv2_w"], p["conv2_b"], 1,
                              ((1, 1), (1, 1))),
                         p["bn2_g"], p["bn2_b"], p["bn2_m"], p["bn2_v"]))
    Cin, Cout = x_nchw.shape[1], p["conv1_w"].shape[-1]
    if stride != 1 or Cin != Cout:
        sc = bn(conv(x_nchw, p["sc_w"], p["sc_b"], stride, ((0, 0), (0, 0))),
                p["bns_g"], p["bns_b"], p["bns_m"], p["bns_v"])
    else:
        sc = x_nchw
    sq = jnp.mean(res, axis=(2, 3))                                   # (N, C)
    h = jax.nn.relu(jnp.dot(sq, p["fc1_w"], precision=hi) + p["fc1_b"])
    e = jax.nn.sigmoid(jnp.dot(h, p["fc2_w"], precision=hi) + p["fc2_b"])
    return jax.nn.relu(res * e[:, :, None, None] + sc)


if __name__ == "__main__":
    # Small shapes consistent with the module: stride=2 and Cin != Cout so the
    # conv shortcut path is exercised; r=4 keeps the SE hidden dim >= 1.
    batch, in_channels, out_channels = 2, 16, 32
    H = W = 32
    stride, r = 2, 4
    hidden = out_channels // r

    key = jax.random.PRNGKey(0)
    ks = jax.random.split(key, 21)

    def nrm(k, shape, scale=0.1):
        return (scale * jax.random.normal(k, shape)).astype(jnp.float32)

    params = {
        "conv1_w": nrm(ks[0], (3, 3, in_channels, out_channels)),
        "conv1_b": nrm(ks[1], (out_channels,)),
        "bn1_g": 1.0 + 0.1 * jax.random.normal(ks[2], (out_channels,)),
        "bn1_b": nrm(ks[3], (out_channels,)),
        "bn1_m": nrm(ks[4], (out_channels,)),
        "bn1_v": 1.0 + 0.5 * jax.random.uniform(ks[5], (out_channels,)),
        "conv2_w": nrm(ks[6], (3, 3, out_channels, out_channels)),
        "conv2_b": nrm(ks[7], (out_channels,)),
        "bn2_g": 1.0 + 0.1 * jax.random.normal(ks[8], (out_channels,)),
        "bn2_b": nrm(ks[9], (out_channels,)),
        "bn2_m": nrm(ks[10], (out_channels,)),
        "bn2_v": 1.0 + 0.5 * jax.random.uniform(ks[11], (out_channels,)),
        "sc_w": nrm(ks[12], (1, 1, in_channels, out_channels)),
        "sc_b": nrm(ks[13], (out_channels,)),
        "bns_g": 1.0 + 0.1 * jax.random.normal(ks[14], (out_channels,)),
        "bns_b": nrm(ks[15], (out_channels,)),
        "bns_m": nrm(ks[16], (out_channels,)),
        "bns_v": 1.0 + 0.5 * jax.random.uniform(ks[17], (out_channels,)),
        "fc1_w": nrm(ks[18], (out_channels, hidden), scale=0.3),
        "fc1_b": jnp.zeros((hidden,), jnp.float32),
        "fc2_w": nrm(ks[19], (hidden, out_channels), scale=0.3),
        "fc2_b": jnp.zeros((out_channels,), jnp.float32),
    }
    params = {k: v.astype(jnp.float32) for k, v in params.items()}

    x = jax.random.normal(ks[20], (batch, in_channels, H, W), jnp.float32)

    out = basic_residual_se_block_forward(x, params, stride)
    out = jax.block_until_ready(out)

    ref = jax.block_until_ready(_reference_forward(x, params, stride))

    assert out.shape == (batch, out_channels, H // stride, W // stride), out.shape
    np.testing.assert_allclose(np.asarray(out), np.asarray(ref),
                               atol=2e-2, rtol=2e-2)
    print("KERNEL_OK")
</pallas_src>

<mosaic_0001>
module attributes {stable_mosaic.version = 11 : i64} {
  func.func @_gemm_bias_act_kernel(%arg0: i32, %arg1: memref<256x144xf32, #tpu.memory_space<vmem>>, %arg2: memref<144x128xf32, #tpu.memory_space<vmem>>, %arg3: memref<1x128xf32, #tpu.memory_space<vmem>>, %arg4: memref<256x128xf32, #tpu.memory_space<vmem>>) attributes {dimension_semantics = [#tpu.dimension_semantics<parallel>], iteration_bounds = array<i64: 2>, scalar_prefetch = 0 : i64, scratch_operands = 0 : i64, tpu.core_type = #tpu.core_type<tc>, window_params = [{transform_indices = @transform_0, window_bounds = array<i64: 256, 144>}, {pipeline_mode = #tpu.pipeline_mode<synchronous>, transform_indices = @transform_1, window_bounds = array<i64: 144, 128>}, {pipeline_mode = #tpu.pipeline_mode<synchronous>, transform_indices = @transform_2, window_bounds = array<i64: 1, 128>}, {transform_indices = @transform_3, window_bounds = array<i64: 256, 128>}]} {
    %c0 = arith.constant 0 : index
    %c0_0 = arith.constant 0 : index
    %0 = vector.load %arg1[%c0, %c0_0] : memref<256x144xf32, #tpu.memory_space<vmem>>, vector<256x144xf32>
    %c0_1 = arith.constant 0 : index
    %c0_2 = arith.constant 0 : index
    %1 = vector.load %arg2[%c0_1, %c0_2] : memref<144x128xf32, #tpu.memory_space<vmem>>, vector<144x128xf32>
    %cst = arith.constant dense<0.000000e+00> : vector<256x128xf32>
    %2 = tpu.matmul %0, %1, %cst {dimension_numbers = #tpu.dot_dimension_numbers<[1], [0], [0], [1], [0, 0, 1, 1], [], []>} : vector<256x144xf32>, vector<144x128xf32>, vector<256x128xf32> -> vector<256x128xf32>
    %c0_3 = arith.constant 0 : index
    %c0_4 = arith.constant 0 : index
    %3 = vector.load %arg3[%c0_3, %c0_4] : memref<1x128xf32, #tpu.memory_space<vmem>>, vector<1x128xf32>
    %4 = vector.broadcast %3 : vector<1x128xf32> to vector<256x128xf32>
    %5 = arith.addf %2, %4 : vector<256x128xf32>
    %cst_5 = arith.constant 0.000000e+00 : f32
    %6 = vector.broadcast %cst_5 : f32 to vector<256x128xf32>
    %7 = arith.maximumf %5, %6 : vector<256x128xf32>
    %c0_6 = arith.constant 0 : index
    %c0_7 = arith.constant 0 : index
    %8 = vector.load %arg4[%c0_6, %c0_7] : memref<256x128xf32, #tpu.memory_space<vmem>>, vector<256x128xf32>
    tpu.vector_store %arg4[%c0_6, %c0_7], %7 {strides = array<i32>} : memref<256x128xf32, #tpu.memory_space<vmem>>, vector<256x128xf32>,
    return
  }
  func.func @transform_0(%arg0: i32) -> (i32, i32) {
    %c0_i32 = arith.constant 0 : i32
    %c0_i32_0 = arith.constant 0 : i32
    return %arg0, %c0_i32 : i32, i32
  }
  func.func @transform_1(%arg0: i32) -> (i32, i32) {
    %c0_i32 = arith.constant 0 : i32
    %c0_i32_0 = arith.constant 0 : i32
    %c0_i32_1 = arith.constant 0 : i32
    return %c0_i32, %c0_i32_0 : i32, i32
  }
  func.func @transform_2(%arg0: i32) -> (i32, i32) {
    %c0_i32 = arith.constant 0 : i32
    %c0_i32_0 = arith.constant 0 : i32
    %c0_i32_1 = arith.constant 0 : i32
    return %c0_i32, %c0_i32_0 : i32, i32
  }
  func.func @transform_3(%arg0: i32) -> (i32, i32) {
    %c0_i32 = arith.constant 0 : i32
    %c0_i32_0 = arith.constant 0 : i32
    return %arg0, %c0_i32 : i32, i32
  }
}

</mosaic_0001>

<bundles_post_ra>
// kernel: tpu_custom_call.1
= control target key start
LH: loop header
LB: loop body
LE: loop exit
PB: predicated region body
PF: predicated region fallthrough
CT: control target
= control target key end

     0   :  { %8 = vsyncpa [#allocation3], 0  ;;  %s1267_s0 = inlined_call_operand.vmem [shape: f32[512,144], index: 0, kind: input, shape index: {}]   ;;  %s1268_s1 = inlined_call_operand.vmem [shape: f32[144,128], index: 1, kind: input, shape index: {}]   ;;  %s1269_s2 = inlined_call_operand.vmem [shape: f32[1,128], index: 2, kind: input, shape index: {}]   ;;  %s1270_s3 = inlined_call_operand.hbm [shape: f32[512,128], index: 3, kind: output, shape index: {}]  }
   0x1   :  { %10 = vsyncpa [#allocation3 + $0x1], 0  ;;  %s935_s12 = smov 0   ;;  %s937_s13 = smov 0  }
   0x2   :  { %s939_s14 = smov 0   ;;  %s941_s15 = smov 0  }
   0x3 LB: > { %s956_s16 = sadd.s32 4294967295, %s911_s15   ;;  %s726_s17 = sadd.s32 4294967294, %s911_s15   ;;  %s911_s15 = sphi %s941_s15, %s1276_s15   ;;  %s907_s14 = sphi %s939_s14, %s1275_s14   ;;  %s903_s13 = sphi %s937_s13, %s1274_s13   ;;  %s899_s12 = sphi %s935_s12, %s1273_s12  }
   0x4   : > { %s960_s18 = sadd.s32 1, %s911_s15   ;;  %s91_s19 = sadd.s32 1, %s907_s14 }
   0x5   : > { %s88_s20 = ssub.s32 %s911_s15, %s960_s18  ;;  %p101_p0 = scmp.ne.s32.totalorder %s907_s14, %s903_s13 }
   0x6   : > { %p89_p1 = scmp.eq.s32.totalorder %s88_s20, 0  ;;  %p102_p2 = scmp.eq.s32.totalorder %s956_s16, 1 }
   0x7   : > { %p107_p3 = scmp.ne.s32.totalorder %s903_s13, %s899_s12  ;;  %p108_p4 = scmp.eq.s32.totalorder %s726_s17, 1 }
   0x8   : > { %s971_s21 = scalar_select %p89_p1, %s907_s14, %s91_s19  }
   0x9   : > { %p973_p5 = por %p102_p2, %p101_p0  ;;  %p977_p6 = por %p108_p4, %p107_p3 }
   0xa   : > { %p729_p7 = scmp.ge.s32.totalorder %s911_s15, 1  ;;  %p142_p8 = scmp.lt.s32.totalorder %s911_s15, 3 }
   0xc   : > { %p143_p9 = pnand %p729_p7, %p142_p8 }
   0xd   : > { %s731_s28 = sshll.u32 (!%p143_p9), %s956_s16, 5  ;;  %s164_s5 = sand.u32 (!%p143_p9), 1, %s903_s13  }
   0xe   : > { %146 = sbr.rel (%p143_p9) target bundleno = 314 (0x13a), region = 32  ;;  %p168_p10 = scmp.lt.s32.totalorder (!%p143_p9), %s731_s28, 63 }
   0xf   : > { %s730_s6 = sshll.u32 (!%p143_p9), %s164_s5, 8  ;;  %s869_s27 = scalar_lea.hbm (!%p143_p9), %s1270_s3, 512 }
  0x10   : > { %s1156_s7 = scalar_lea.vmem (!%p143_p9), [#allocation2], %s730_s6 }
  0x11   : > { %s661_s11 = sshll.u32 (!%p143_p9), %s1156_s7, 4  ;;  %s662_s11 = int_to_ptr.vmem [resolvable:$true] %s661_s11 }
  0x13   : > { %v254_v0 = vld [vmem:[%s1268_s1 + $0x78] sm:$0xff]  ;;  %v253_v1 = vld [vmem:[%s1268_s1 + $0x70] sm:$0xff]  ;;  %v993_v2 = vld [vmem:[%s1268_s1 + $0x88] sm:$0xff]  ;;  %s1278_s28 = smov (!%p168_p10, %s731_s28), 63  ;;  %vm261_vm0 = vcmask 130048  }
  0x14   : > { %358 = vmatpush.msra.mxu0 %v254_v0  ;;  %773 = vmatpush.msra.mxu2 %v254_v0  ;;  %v998_v3 = vld [vmem:[%s1268_s1 + $0x80] sm:$0xff]  ;;  %v252_v4 = vld [vmem:[%s1268_s1 + $0x68] sm:$0xff]  ;;  %s771_s10 = sshll.u32 %s1278_s28, 4  ;;  %v250_v6 = vld [vmem:[%s1268_s1 + $0x58] sm:$0xff] }
  0x15   : > { %774 = vmatpush.msra.mxu3 %v254_v0  ;;  %485 = vmatpush.msra.mxu1 %v993_v2  ;;  %v251_v5 = vld [vmem:[%s1268_s1 + $0x60] sm:$0xff]  ;;  %s1011_s19 = scalar_lea.vmem %s1267_s0, %s771_s10  ;;  %v249_v8 = vld [vmem:[%s1268_s1 + $0x50] sm:$0xff]  ;;  %v248_v9 = vld [vmem:[%s1268_s1 + $0x48] sm:$0xff] }
  0x16   : > { %359 = vmatpush.msra.mxu0 %v253_v1  ;;  %775 = vmatpush.msra.mxu2 %v253_v1  ;;  %v176_v7 = vld [vmem:[%s1011_s19 + $0x8] sm:$0xff]  ;;  %v247_v10 = vld [vmem:[%s1268_s1 + $0x40] sm:$0xff]  ;;  %v178_v11 = vld [vmem:[%s1011_s19 + $0x18] sm:$0xff] }
  0x17   : > { %776 = vmatpush.msra.mxu3 %v253_v1  ;;  %486 = vmatpush.msra.mxu1 %v998_v3  ;;  %v246_v12 = vld [vmem:[%s1268_s1 + $0x38] sm:$0xff]  ;;  %v245_v13 = vld [vmem:[%s1268_s1 + $0x30] sm:$0xff]  ;;  %v244_v14 = vld [vmem:[%s1268_s1 + $0x28] sm:$0xff] }
  0x18   : > { %360 = vmatpush.msra.mxu0 %v252_v4  ;;  %777 = vmatpush.msra.mxu2 %v252_v4  ;;  %v243_v15 = vld [vmem:[%s1268_s1 + $0x20] sm:$0xff]  ;;  %v180_v16 = vld [vmem:[%s1011_s19 + $0x28] sm:$0xff]  ;;  %v242_v17 = vld [vmem:[%s1268_s1 + $0x18] sm:$0xff] }
  0x19   : > { %778 = vmatpush.msra.mxu3 %v252_v4  ;;  %734 = vmatmul.msk.f32.vlgmr.msra.gmra.mxu1 %vm261_vm0, %v176_v7  ;;  %v241_v18 = vld [vmem:[%s1268_s1 + $0x10] sm:$0xff]  ;;  %v240_v19 = vld [vmem:[%s1268_s1 + $0x8] sm:$0xff]  ;;  %v239_v20 = vld [vmem:[%s1268_s1] sm:$0xff] }
  0x1a   : > { %361 = vmatpush.msra.mxu0 %v251_v5  ;;  %779 = vmatpush.msra.mxu2 %v251_v5  ;;  %v175_v21 = vld [vmem:[%s1011_s19] sm:$0xff]  ;;  %v205_v22 = vld [vmem:[%s1011_s19 + $0xf0] sm:$0xff]  ;;  %v182_v24 = vld [vmem:[%s1011_s19 + $0x38] sm:$0xff] }
  0x1b   : > { %780 = vmatpush.msra.mxu3 %v251_v5  ;;  %v237_v23 = vld [vmem:[%s1011_s19 + $0x1f0] sm:$0xff]  ;;  %v207_v26 = vld [vmem:[%s1011_s19 + $0x100] sm:$0xff]  ;;  %v212_v27 = vld [vmem:[%s1011_s19 + $0x128] sm:$0xff] }
  0x1c   : > { %362 = vmatpush.msra.mxu0 %v250_v6  ;;  %781 = vmatpush.msra.mxu2 %v250_v6  ;;  %v177_v25 = vld [vmem:[%s1011_s19 + $0x10] sm:$0xff]  ;;  %v184_v28 = vld [vmem:[%s1011_s19 + $0x48] sm:$0xff]  ;;  %v179_v29 = vld [vmem:[%s1011_s19 + $0x20] sm:$0xff] }
  0x1d   : > { %782 = vmatpush.msra.mxu3 %v250_v6  ;;  %v209_v30 = vld [vmem:[%s1011_s19 + $0x110] sm:$0xff]  ;;  %v214_v31 = vld [vmem:[%s1011_s19 + $0x138] sm:$0xff]  ;;  %v211_v34 = vld [vmem:[%s1011_s19 + $0x120] sm:$0xff] }
  0x1e   : > { %363 = vmatpush.msra.mxu0 %v249_v8  ;;  %783 = vmatpush.msra.mxu2 %v249_v8  ;;  %v186_v32 = vld [vmem:[%s1011_s19 + $0x58] sm:$0xff]  ;;  %v181_v33 = vld [vmem:[%s1011_s19 + $0x30] sm:$0xff]  ;;  %v216_v35 = vld [vmem:[%s1011_s19 + $0x148] sm:$0xff] }
  0x1f   : > { %784 = vmatpush.msra.mxu3 %v249_v8  ;;  %v188_v36 = vld [vmem:[%s1011_s19 + $0x68] sm:$0xff]  ;;  %v183_v37 = vld [vmem:[%s1011_s19 + $0x40] sm:$0xff]  ;;  %v213_v38 = vld [vmem:[%s1011_s19 + $0x130] sm:$0xff] }
  0x20   : > { %364 = vmatpush.msra.mxu0 %v248_v9  ;;  %785 = vmatpush.msra.mxu2 %v248_v9  ;;  %v218_v39 = vld [vmem:[%s1011_s19 + $0x158] sm:$0xff]  ;;  %v185_v41 = vld [vmem:[%s1011_s19 + $0x50] sm:$0xff]  ;;  %v215_v42 = vld [vmem:[%s1011_s19 + $0x140] sm:$0xff] }
  0x21   : > { %786 = vmatpush.msra.mxu3 %v248_v9  ;;  %735 = vmatmul.msk.f32.gmra.mxu1 %vm261_vm0, %v178_v11  ;;  %v190_v40 = vld [vmem:[%s1011_s19 + $0x78] sm:$0xff]  ;;  %v220_v43 = vld [vmem:[%s1011_s19 + $0x168] sm:$0xff]  ;;  %v187_v45 = vld [vmem:[%s1011_s19 + $0x60] sm:$0xff] }
  0x22   : > { %365 = vmatpush.msra.mxu0 %v247_v10  ;;  %787 = vmatpush.msra.mxu2 %v247_v10  ;;  %v192_v44 = vld [vmem:[%s1011_s19 + $0x88] sm:$0xff]  ;;  %v217_v46 = vld [vmem:[%s1011_s19 + $0x150] sm:$0xff]  ;;  %v222_v47 = vld [vmem:[%s1011_s19 + $0x178] sm:$0xff] }
  0x23   : > { %788 = vmatpush.msra.mxu3 %v247_v10  ;;  %v194_v48 = vld [vmem:[%s1011_s19 + $0x98] sm:$0xff]  ;;  %v189_v49 = vld [vmem:[%s1011_s19 + $0x70] sm:$0xff]  ;;  %v219_v50 = vld [vmem:[%s1011_s19 + $0x160] sm:$0xff] }
  0x24   : > { %366 = vmatpush.msra.mxu0 %v246_v12  ;;  %789 = vmatpush.msra.mxu2 %v246_v12  ;;  %v224_v51 = vld [vmem:[%s1011_s19 + $0x188] sm:$0xff]  ;;  %v191_v53 = vld [vmem:[%s1011_s19 + $0x80] sm:$0xff]  ;;  %v221_v54 = vld [vmem:[%s1011_s19 + $0x170] sm:$0xff] }
  0x25   : > { %790 = vmatpush.msra.mxu3 %v246_v12  ;;  %v196_v52 = vld [vmem:[%s1011_s19 + $0xa8] sm:$0xff]  ;;  %v226_v55 = vld [vmem:[%s1011_s19 + $0x198] sm:$0xff]  ;;  %v193_v57 = vld [vmem:[%s1011_s19 + $0x90] sm:$0xff] }
  0x26   : > { %367 = vmatpush.msra.mxu0 %v245_v13  ;;  %791 = vmatpush.msra.mxu2 %v245_v13  ;;  %v198_v56 = vld [vmem:[%s1011_s19 + $0xb8] sm:$0xff]  ;;  %v223_v58 = vld [vmem:[%s1011_s19 + $0x180] sm:$0xff]  ;;  %v228_v59 = vld [vmem:[%s1011_s19 + $0x1a8] sm:$0xff] }
  0x27   : > { %792 = vmatpush.msra.mxu3 %v245_v13  ;;  %v200_v60 = vld [vmem:[%s1011_s19 + $0xc8] sm:$0xff]  ;;  %v195_v61 = vld [vmem:[%s1011_s19 + $0xa0] sm:$0xff]  ;;  %v225_v62 = vld [vmem:[%s1011_s19 + $0x190] sm:$0xff] }
  0x28   : > { %368 = vmatpush.msra.mxu0 %v244_v14  ;;  %793 = vmatpush.msra.mxu2 %v244_v14  ;;  %v230_v63 = vld [vmem:[%s1011_s19 + $0x1b8] sm:$0xff]  ;;  %v197_v1 = vld [vmem:[%s1011_s19 + $0xb0] sm:$0xff]  ;;  %v204_v4 = vld [vmem:[%s1011_s19 + $0xe8] sm:$0xff] }
  0x29   : > { %794 = vmatpush.msra.mxu3 %v244_v14  ;;  %736 = vmatmul.msk.f32.gmra.mxu1 %vm261_vm0, %v180_v16  ;;  %v202_v0 = vld [vmem:[%s1011_s19 + $0xd8] sm:$0xff]  ;;  %v199_v5 = vld [vmem:[%s1011_s19 + $0xc0] sm:$0xff]  ;;  %v229_v6 = vld [vmem:[%s1011_s19 + $0x1b0] sm:$0xff] }
  0x2a   : > { %369 = vmatpush.msra.mxu0 %v243_v15  ;;  %795 = vmatpush.msra.mxu2 %v243_v15  ;;  %v234_v7 = vld [vmem:[%s1011_s19 + $0x1d8] sm:$0xff]  ;;  %v201_v10 = vld [vmem:[%s1011_s19 + $0xd0] sm:$0xff]  ;;  %v231_v11 = vld [vmem:[%s1011_s19 + $0x1c0] sm:$0xff] }
  0x2b   : > { %796 = vmatpush.msra.mxu3 %v243_v15  ;;  %v206_v8 = vld [vmem:[%s1011_s19 + $0xf8] sm:$0xff]  ;;  %v236_v12 = vld [vmem:[%s1011_s19 + $0x1e8] sm:$0xff]  ;;  %v203_v15 = vld [vmem:[%s1011_s19 + $0xe0] sm:$0xff] }
  0x2c   : > { %370 = vmatpush.msra.mxu0 %v242_v17  ;;  %797 = vmatpush.msra.mxu2 %v242_v17  ;;  %v208_v13 = vld [vmem:[%s1011_s19 + $0x108] sm:$0xff]  ;;  %v233_v16 = vld [vmem:[%s1011_s19 + $0x1d0] sm:$0xff] }
  0x2d   : > { %798 = vmatpush.msra.mxu3 %v242_v17  ;;  %v238_v17 = vld [vmem:[%s1011_s19 + $0x1f8] sm:$0xff] }
  0x2e   : > { %371 = vmatpush.msra.mxu0 %v241_v18  ;;  %799 = vmatpush.msra.mxu2 %v241_v18 }
  0x2f   : > { %800 = vmatpush.msra.mxu3 %v241_v18  ;;  %v210_v18 = vld [vmem:[%s1011_s19 + $0x118] sm:$0xff] }
  0x30   : > { %372 = vmatpush.msra.mxu0 %v240_v19  ;;  %801 = vmatpush.msra.mxu2 %v240_v19 }
  0x31   : > { %802 = vmatpush.msra.mxu3 %v240_v19  ;;  %737 = vmatmul.msk.f32.gmra.mxu1 %vm261_vm0, %v182_v24 }
  0x32   : > { %373 = vmatpush.msra.mxu0 %v239_v20  ;;  %803 = vmatpush.msra.mxu2 %v239_v20 }
  0x33   : > { %804 = vmatpush.msra.mxu3 %v239_v20  ;;  %374 = vmatmul.f32.vlgmr.msra.gmra.mxu0 %v175_v21  ;;  %v235_v20 = vld [vmem:[%s1011_s19 + $0x1e0] sm:$0xff] }
  0x34   : > { %419 = vmatmul.f32.vlgmr.msra.gmra.mxu2 %v205_v22  ;;  %467 = vmatmul.f32.vlgmr.msra.gmra.mxu3 %v237_v23  ;;  %v1150_v21 = vld [vmem:[%s1269_s2] ss:$0 sm:$0xff] }
  0x35   : > { %805 = vmatpush.msrb.mxu3 %v993_v2  ;;  %v227_v2 = vld [vmem:[%s1011_s19 + $0x1a0] sm:$0xff] }
  0x37   : > { %806 = vmatpush.msrb.mxu3 %v998_v3  ;;  %v232_v3 = vld [vmem:[%s1011_s19 + $0x1c8] sm:$0xff]  ;;  %s772_s19 = sshll.u32 %s956_s16, 8  ;;  %s649_s16 = scalar_lea.sflag [#allocation3], %s164_s5 }
  0x38   : > { %s660_s10 = scalar_lea.hbm %s1270_s3, %s772_s19 }
  0x39   : > { %738 = vmatmul.msk.f32.gmra.mxu1 %vm261_vm0, %v184_v28  ;;  %s663_s17 = sshll.u32 %s660_s10, 4  ;;  %s664_s17 = int_to_ptr.hbm [resolvable:$true] %s663_s17 }
  0x3a   : > { %s863_s20 = sshra.s32 %s664_s17, 4  ;;  %s864_s20 = int_to_ptr.hbm [resolvable:$true] %s863_s20 }
  0x3b   : > { %377 = vmatmul.f32.gmra.mxu0 %v177_v25  ;;  %s865_s24 = scalar_lea.hbm %s864_s20, 256  ;;  %p870_p0 = scmp.lt.s32.totalorder %s864_s20, %s1270_s3 }
  0x3c   : > { %422 = vmatmul.f32.gmra.mxu2 %v207_v26  ;;  %752 = vmatmul.msk.f32.vlgmr.msrb.gmra.mxu3 %vm261_vm0, %v212_v27  ;;  %p866_p11 = scmp.ne.s32.totalorder %s864_s20, %s865_s24  ;;  %p871_p1 = scmp.lt.s32.totalorder %s869_s27, %s865_s24 }
  0x3e   : > { %p867_p12 = pnand %p866_p11, %p973_p5  ;;  %p872_p2 = por %p871_p1, %p870_p0 }
  0x40   : > { %p868_p13 = pneg %p867_p12 }
  0x41   : > { %739 = vmatmul.msk.f32.gmra.mxu1 %vm261_vm0, %v186_v32 }
  0x42   : > { %p873_p3 = pnand %p872_p2, %p868_p13 }
  0x43   : > { %380 = vmatmul.f32.gmra.mxu0 %v179_v29 }
  0x44   : > { %425 = vmatmul.f32.gmra.mxu2 %v209_v30  ;;  %753 = vmatmul.msk.f32.gmra.mxu3 %vm261_vm0, %v214_v31 }
  0x49   : > { %740 = vmatmul.msk.f32.gmra.mxu1 %vm261_vm0, %v188_v36 }
  0x4b   : > { %383 = vmatmul.f32.gmra.mxu0 %v181_v33 }
  0x4c   : > { %428 = vmatmul.f32.gmra.mxu2 %v211_v34  ;;  %754 = vmatmul.msk.f32.gmra.mxu3 %vm261_vm0, %v216_v35 }
  0x51   : > { %741 = vmatmul.msk.f32.gmra.mxu1 %vm261_vm0, %v190_v40 }
  0x53   : > { %386 = vmatmul.f32.gmra.mxu0 %v183_v37 }
  0x54   : > { %431 = vmatmul.f32.gmra.mxu2 %v213_v38  ;;  %755 = vmatmul.msk.f32.gmra.mxu3 %vm261_vm0, %v218_v39 }
  0x59   : > { %742 = vmatmul.msk.f32.gmra.mxu1 %vm261_vm0, %v192_v44 }
  0x5b   : > { %389 = vmatmul.f32.gmra.mxu0 %v185_v41 }
  0x5c   : > { %434 = vmatmul.f32.gmra.mxu2 %v215_v42  ;;  %756 = vmatmul.msk.f32.gmra.mxu3 %vm261_vm0, %v220_v43 }
  0x61   : > { %743 = vmatmul.msk.f32.gmra.mxu1 %vm261_vm0, %v194_v48 }
  0x63   : > { %392 = vmatmul.f32.gmra.mxu0 %v187_v45 }
  0x64   : > { %437 = vmatmul.f32.gmra.mxu2 %v217_v46  ;;  %757 = vmatmul.msk.f32.gmra.mxu3 %vm261_vm0, %v222_v47 }
  0x69   : > { %744 = vmatmul.msk.f32.gmra.mxu1 %vm261_vm0, %v196_v52 }
  0x6b   : > { %395 = vmatmul.f32.gmra.mxu0 %v189_v49 }
  0x6c   : > { %440 = vmatmul.f32.gmra.mxu2 %v219_v50  ;;  %758 = vmatmul.msk.f32.gmra.mxu3 %vm261_vm0, %v224_v51 }
  0x71   : > { %745 = vmatmul.msk.f32.gmra.mxu1 %vm261_vm0, %v198_v56 }
  0x73   : > { %398 = vmatmul.f32.gmra.mxu0 %v191_v53 }
  0x74   : > { %443 = vmatmul.f32.gmra.mxu2 %v221_v54  ;;  %759 = vmatmul.msk.f32.gmra.mxu3 %vm261_vm0, %v226_v55 }
  0x79   : > { %746 = vmatmul.msk.f32.gmra.mxu1 %vm261_vm0, %v200_v60 }
  0x7b   : > { %401 = vmatmul.f32.gmra.mxu0 %v193_v57 }
  0x7c   : > { %446 = vmatmul.f32.gmra.mxu2 %v223_v58  ;;  %760 = vmatmul.msk.f32.gmra.mxu3 %vm261_vm0, %v228_v59 }
  0x81   : > { %747 = vmatmul.msk.f32.gmra.mxu1 %vm261_vm0, %v202_v0 }
  0x83   : > { %404 = vmatmul.f32.gmra.mxu0 %v195_v61 }
  0x84   : > { %449 = vmatmul.f32.gmra.mxu2 %v225_v62  ;;  %761 = vmatmul.msk.f32.gmra.mxu3 %vm261_vm0, %v230_v63 }
  0x89   : > { %748 = vmatmul.msk.f32.gmra.mxu1 %vm261_vm0, %v204_v4 }
  0x8b   : > { %407 = vmatmul.f32.gmra.mxu0 %v197_v1 }
  0x8c   : > { %452 = vmatmul.f32.gmra.mxu2 %v227_v2  ;;  %762 = vmatmul.msk.f32.gmra.mxu3 %vm261_vm0, %v232_v3 }
  0x91   : > { %749 = vmatmul.msk.f32.gmra.mxu1 %vm261_vm0, %v206_v8 }
  0x93   : > { %410 = vmatmul.f32.gmra.mxu0 %v199_v5 }
  0x94   : > { %455 = vmatmul.f32.gmra.mxu2 %v229_v6  ;;  %763 = vmatmul.msk.f32.gmra.mxu3 %vm261_vm0, %v234_v7 }
  0x96   : > { %v488_v9 = vpop.f32.mrf.mxu1 }
  0x99   : > { %750 = vmatmul.msk.f32.gmra.mxu1 %vm261_vm0, %v208_v13 }
  0x9b   : > { %413 = vmatmul.f32.gmra.mxu0 %v201_v10 }
  0x9c   : > { %458 = vmatmul.f32.gmra.mxu2 %v231_v11  ;;  %764 = vmatmul.msk.f32.gmra.mxu3 %vm261_vm0, %v236_v12 }
  0x9e   : > { %v491_v14 = vpop.f32.mrf.mxu1 }
  0xa1   : > { %751 = vmatmul.msk.f32.gmra.mxu1 %vm261_vm0, %v210_v18 }
  0xa3   : > { %416 = vmatmul.f32.gmra.mxu0 %v203_v15 }
  0xa4   : > { %461 = vmatmul.f32.gmra.mxu2 %v233_v16  ;;  %765 = vmatmul.msk.f32.gmra.mxu3 %vm261_vm0, %v238_v17 }
  0xa6   : > { %v494_v19 = vpop.f32.mrf.mxu1 }
  0xac   : > { %464 = vmatmul.f32.gmra.mxu2 %v235_v20 }
  0xae   : > { %v497_v24 = vpop.f32.mrf.mxu1 }
  0xb0   : > { %v375_v22 = vpop.f32.mrf.mxu0 }
  0xb1   : > { %v376_v23 = vadd.f32 %v1150_v21, %v375_v22 }
  0xb3   : > { %v489_v25 = vadd.f32 %v488_v9, %v376_v23 }
  0xb5   : > { %v584_v26 = vmax.f32 %v489_v25, 0.0 }
  0xb6   : > { %v500_v31 = vpop.f32.mrf.mxu1 }
  0xb7   : > { %616 = vst [vmem:[%s1156_s7] sm:$0xff] %v584_v26  ;;  %v1159_v27 = vpop.f32.mrf.mxu2  ;;  %v1161_v28 = vpop.f32.mrf.mxu3 }
  0xb8   : > { %v378_v29 = vpop.f32.mrf.mxu0 }
  0xb9   : > { %v379_v30 = vadd.f32 %v1150_v21, %v378_v29 }
  0xbb   : > { %v492_v32 = vadd.f32 %v491_v14, %v379_v30 }
  0xbd   : > { %v585_v33 = vmax.f32 %v492_v32, 0.0 }
  0xbe   : > { %v503_v38 = vpop.f32.mrf.mxu1 }
  0xbf   : > { %617 = vst [vmem:[%s1156_s7 + $0x8] sm:$0xff] %v585_v33  ;;  %v1165_v34 = vpop.f32.mrf.mxu2  ;;  %v542_v35 = vpop.f32.mrf.mxu3 }
  0xc0   : > { %v381_v36 = vpop.f32.mrf.mxu0 }
  0xc1   : > { %v382_v37 = vadd.f32 %v1150_v21, %v381_v36 }
  0xc3   : > { %v495_v39 = vadd.f32 %v494_v19, %v382_v37 }
  0xc5   : > { %v586_v40 = vmax.f32 %v495_v39, 0.0 }
  0xc6   : > { %v506_v45 = vpop.f32.mrf.mxu1 }
  0xc7   : > { %618 = vst [vmem:[%s1156_s7 + $0x10] sm:$0xff] %v586_v40  ;;  %v1169_v41 = vpop.f32.mrf.mxu2  ;;  %v545_v42 = vpop.f32.mrf.mxu3 }
  0xc8   : > { %v384_v43 = vpop.f32.mrf.mxu0 }
  0xc9   : > { %v385_v44 = vadd.f32 %v1150_v21, %v384_v43 }
  0xcb   : > { %v498_v46 = vadd.f32 %v497_v24, %v385_v44 }
  0xcd   : > { %v587_v47 = vmax.f32 %v498_v46, 0.0 }
  0xce   : > { %v509_v54 = vpop.f32.mrf.mxu1 }
  0xcf   : > { %619 = vst [vmem:[%s1156_s7 + $0x18] sm:$0xff] %v587_v47  ;;  %v429_v48 = vpop.f32.mrf.mxu2  ;;  %v548_v49 = vpop.f32.mrf.mxu3 }
  0xd0   : > { %v430_v50 = vadd.f32 %v1150_v21, %v429_v48  ;;  %v387_v51 = vpop.f32.mrf.mxu0 }
  0xd1   : > { %v388_v52 = vadd.f32 %v1150_v21, %v387_v51 }
  0xd2   : > { %v543_v53 = vadd.f32 %v542_v35, %v430_v50 }
  0xd3   : > { %v501_v55 = vadd.f32 %v500_v31, %v388_v52 }
  0xd4   : > { %v602_v56 = vmax.f32 %v543_v53, 0.0 }
  0xd5   : > { %v588_v57 = vmax.f32 %v501_v55, 0.0 }
  0xd6   : > { %634 = vst [vmem:[%s1156_s7 + $0x90] sm:$0xff] %v602_v56  ;;  %v512_v0 = vpop.f32.mrf.mxu1 }
  0xd7   : > { %620 = vst [vmem:[%s1156_s7 + $0x20] sm:$0xff] %v588_v57  ;;  %v432_v58 = vpop.f32.mrf.mxu2  ;;  %v551_v59 = vpop.f32.mrf.mxu3 }
  0xd8   : > { %v433_v60 = vadd.f32 %v1150_v21, %v432_v58  ;;  %v390_v61 = vpop.f32.mrf.mxu0 }
  0xd9   : > { %v391_v62 = vadd.f32 %v1150_v21, %v390_v61 }
  0xda   : > { %v546_v63 = vadd.f32 %v545_v42, %v433_v60 }
  0xdb   : > { %v504_v1 = vadd.f32 %v503_v38, %v391_v62 }
  0xdc   : > { %v603_v2 = vmax.f32 %v546_v63, 0.0 }
  0xdd   : > { %v589_v3 = vmax.f32 %v504_v1, 0.0 }
  0xde   : > { %635 = vst [vmem:[%s1156_s7 + $0x98] sm:$0xff] %v603_v2  ;;  %v515_v10 = vpop.f32.mrf.mxu1 }
  0xdf   : > { %621 = vst [vmem:[%s1156_s7 + $0x28] sm:$0xff] %v589_v3  ;;  %v435_v4 = vpop.f32.mrf.mxu2  ;;  %v554_v5 = vpop.f32.mrf.mxu3 }
  0xe0   : > { %v436_v6 = vadd.f32 %v1150_v21, %v435_v4  ;;  %v393_v7 = vpop.f32.mrf.mxu0 }
  0xe1   : > { %v394_v8 = vadd.f32 %v1150_v21, %v393_v7 }
  0xe2   : > { %v549_v9 = vadd.f32 %v548_v49, %v436_v6 }
  0xe3   : > { %v507_v11 = vadd.f32 %v506_v45, %v394_v8 }
  0xe4   : > { %v604_v12 = vmax.f32 %v549_v9, 0.0  ;;  %v421_v9 = vadd.f32 %v1150_v21, %v1159_v27 }
  0xe5   : > { %v590_v13 = vmax.f32 %v507_v11, 0.0 }
  0xe6   : > { %636 = vst [vmem:[%s1156_s7 + $0xa0] sm:$0xff] %v604_v12  ;;  %v518_v20 = vpop.f32.mrf.mxu1 }
  0xe7   : > { %622 = vst [vmem:[%s1156_s7 + $0x30] sm:$0xff] %v590_v13  ;;  %v438_v14 = vpop.f32.mrf.mxu2  ;;  %v557_v15 = vpop.f32.mrf.mxu3 }
  0xe8   : > { %v439_v16 = vadd.f32 %v1150_v21, %v438_v14  ;;  %v396_v17 = vpop.f32.mrf.mxu0 }
  0xe9   : > { %v397_v18 = vadd.f32 %v1150_v21, %v396_v17 }
  0xea   : > { %v552_v19 = vadd.f32 %v551_v59, %v439_v16 }
  0xeb   : > { %v510_v22 = vadd.f32 %v509_v54, %v397_v18 }
  0xec   : > { %v605_v23 = vmax.f32 %v552_v19, 0.0 }
  0xed   : > { %v591_v24 = vmax.f32 %v510_v22, 0.0  ;;  %v424_v22 = vadd.f32 %v1150_v21, %v1165_v34 }
  0xee   : > { %637 = vst [vmem:[%s1156_s7 + $0xa8] sm:$0xff] %v605_v23  ;;  %v521_v33 = vpop.f32.mrf.mxu1 }
  0xef   : > { %623 = vst [vmem:[%s1156_s7 + $0x38] sm:$0xff] %v591_v24  ;;  %v441_v25 = vpop.f32.mrf.mxu2  ;;  %v560_v26 = vpop.f32.mrf.mxu3 }
  0xf0   : > { %v442_v29 = vadd.f32 %v1150_v21, %v441_v25  ;;  %v399_v30 = vpop.f32.mrf.mxu0 }
  0xf1   : > { %v400_v31 = vadd.f32 %v1150_v21, %v399_v30 }
  0xf2   : > { %v555_v32 = vadd.f32 %v554_v5, %v442_v29 }
  0xf3   : > { %v513_v35 = vadd.f32 %v512_v0, %v400_v31 }
  0xf4   : > { %v606_v36 = vmax.f32 %v555_v32, 0.0 }
  0xf5   : > { %v592_v37 = vmax.f32 %v513_v35, 0.0 }
  0xf6   : > { %638 = vst [vmem:[%s1156_s7 + $0xb0] sm:$0xff] %v606_v36  ;;  %v524_v45 = vpop.f32.mrf.mxu1 }
  0xf7   : > { %624 = vst [vmem:[%s1156_s7 + $0x40] sm:$0xff] %v592_v37  ;;  %v444_v38 = vpop.f32.mrf.mxu2  ;;  %v563_v39 = vpop.f32.mrf.mxu3  ;;  %v427_v37 = vadd.f32 %v1150_v21, %v1169_v41 }
  0xf8   : > { %v445_v40 = vadd.f32 %v1150_v21, %v444_v38  ;;  %v402_v42 = vpop.f32.mrf.mxu0 }
  0xf9   : > { %v403_v43 = vadd.f32 %v1150_v21, %v402_v42 }
  0xfa   : > { %v558_v44 = vadd.f32 %v557_v15, %v445_v40 }
  0xfb   : > { %v516_v46 = vadd.f32 %v515_v10, %v403_v43 }
  0xfc   : > { %v607_v47 = vmax.f32 %v558_v44, 0.0 }
  0xfd   : > { %v593_v48 = vmax.f32 %v516_v46, 0.0 }
  0xfe   : > { %639 = vst [vmem:[%s1156_s7 + $0xb8] sm:$0xff] %v607_v47  ;;  %v527_v55 = vpop.f32.mrf.mxu1  ;;  %v469_v47 = vadd.f32 %v1150_v21, %v1161_v28 }
  0xff   : > { %625 = vst [vmem:[%s1156_s7 + $0x48] sm:$0xff] %v593_v48  ;;  %v447_v49 = vpop.f32.mrf.mxu2  ;;  %v566_v50 = vpop.f32.mrf.mxu3 }
 0x100   : > { %v448_v51 = vadd.f32 %v1150_v21, %v447_v49  ;;  %v405_v52 = vpop.f32.mrf.mxu0 }
 0x101   : > { %v406_v53 = vadd.f32 %v1150_v21, %v405_v52 }
 0x102   : > { %v561_v54 = vadd.f32 %v560_v26, %v448_v51 }
 0x103   : > { %v519_v56 = vadd.f32 %v518_v20, %v406_v53 }
 0x104   : > { %v608_v57 = vmax.f32 %v561_v54, 0.0 }
 0x105   : > { %v594_v58 = vmax.f32 %v519_v56, 0.0 }
 0x106   : > { %640 = vst [vmem:[%s1156_s7 + $0xc0] sm:$0xff] %v608_v57  ;;  %v530_v1 = vpop.f32.mrf.mxu1 }
 0x107   : > { %626 = vst [vmem:[%s1156_s7 + $0x50] sm:$0xff] %v594_v58  ;;  %v450_v59 = vpop.f32.mrf.mxu2  ;;  %v569_v60 = vpop.f32.mrf.mxu3 }
 0x108   : > { %v451_v61 = vadd.f32 %v1150_v21, %v450_v59  ;;  %v408_v62 = vpop.f32.mrf.mxu0 }
 0x109   : > { %v409_v63 = vadd.f32 %v1150_v21, %v408_v62 }
 0x10a   : > { %v564_v0 = vadd.f32 %v563_v39, %v451_v61 }
 0x10b   : > { %v522_v2 = vadd.f32 %v521_v33, %v409_v63 }
 0x10c   : > { %v609_v3 = vmax.f32 %v564_v0, 0.0 }
 0x10d   : > { %v595_v4 = vmax.f32 %v522_v2, 0.0 }
 0x10e   : > { %641 = vst [vmem:[%s1156_s7 + $0xc8] sm:$0xff] %v609_v3  ;;  %v533_v12 = vpop.f32.mrf.mxu1 }
 0x10f   : > { %627 = vst [vmem:[%s1156_s7 + $0x58] sm:$0xff] %v595_v4  ;;  %v453_v5 = vpop.f32.mrf.mxu2  ;;  %v572_v6 = vpop.f32.mrf.mxu3  ;;  %v534_v14 = vadd.f32 %v533_v12, %v421_v9 }
 0x110   : > { %v454_v7 = vadd.f32 %v1150_v21, %v453_v5  ;;  %v411_v8 = vpop.f32.mrf.mxu0 }
 0x111   : > { %v412_v10 = vadd.f32 %v1150_v21, %v411_v8  ;;  %v599_v17 = vmax.f32 %v534_v14, 0.0 }
 0x112   : > { %v567_v11 = vadd.f32 %v566_v50, %v454_v7 }
 0x113   : > { %v525_v13 = vadd.f32 %v524_v45, %v412_v10  ;;  %631 = vst [vmem:[%s1156_s7 + $0x78] sm:$0xff] %v599_v17 }
 0x114   : > { %v610_v15 = vmax.f32 %v567_v11, 0.0 }
 0x115   : > { %v596_v16 = vmax.f32 %v525_v13, 0.0 }
 0x116   : > { %642 = vst [vmem:[%s1156_s7 + $0xd0] sm:$0xff] %v610_v15  ;;  %v536_v25 = vpop.f32.mrf.mxu1 }
 0x117   : > { %628 = vst [vmem:[%s1156_s7 + $0x60] sm:$0xff] %v596_v16  ;;  %v456_v18 = vpop.f32.mrf.mxu2  ;;  %v575_v19 = vpop.f32.mrf.mxu3  ;;  %v537_v29 = vadd.f32 %v536_v25, %v424_v22 }
 0x118   : > { %v457_v20 = vadd.f32 %v1150_v21, %v456_v18  ;;  %v414_v27 = vpop.f32.mrf.mxu0 }
 0x119   : > { %v415_v23 = vadd.f32 %v1150_v21, %v414_v27  ;;  %v600_v32 = vmax.f32 %v537_v29, 0.0 }
 0x11a   : > { %v570_v24 = vadd.f32 %v569_v60, %v457_v20 }
 0x11b   : > { %v528_v26 = vadd.f32 %v527_v55, %v415_v23  ;;  %632 = vst [vmem:[%s1156_s7 + $0x80] sm:$0xff] %v600_v32 }
 0x11c   : > { %v611_v30 = vmax.f32 %v570_v24, 0.0 }
 0x11d   : > { %v597_v31 = vmax.f32 %v528_v26, 0.0 }
 0x11e   : > { %643 = vst [vmem:[%s1156_s7 + $0xd8] sm:$0xff] %v611_v30  ;;  %v539_v40 = vpop.f32.mrf.mxu1 }
 0x11f   : > { %629 = vst [vmem:[%s1156_s7 + $0x68] sm:$0xff] %v597_v31  ;;  %v459_v33 = vpop.f32.mrf.mxu2  ;;  %v578_v35 = vpop.f32.mrf.mxu3  ;;  %v540_v43 = vadd.f32 %v539_v40, %v427_v37 }
 0x120   : > { %v460_v36 = vadd.f32 %v1150_v21, %v459_v33  ;;  %v417_v34 = vpop.f32.mrf.mxu0 }
 0x121   : > { %v418_v38 = vadd.f32 %v1150_v21, %v417_v34  ;;  %v601_v46 = vmax.f32 %v540_v43, 0.0 }
 0x122   : > { %v573_v39 = vadd.f32 %v572_v6, %v460_v36 }
 0x123   : > { %v531_v42 = vadd.f32 %v530_v1, %v418_v38  ;;  %633 = vst [vmem:[%s1156_s7 + $0x88] sm:$0xff] %v601_v46 }
 0x124   : > { %v612_v44 = vmax.f32 %v573_v39, 0.0 }
 0x125   : > { %v598_v45 = vmax.f32 %v531_v42, 0.0 }
 0x126   : > { %644 = vst [vmem:[%s1156_s7 + $0xe0] sm:$0xff] %v612_v44 }
 0x127   : > { %630 = vst [vmem:[%s1156_s7 + $0x70] sm:$0xff] %v598_v45  ;;  %v462_v48 = vpop.f32.mrf.mxu2  ;;  %v581_v41 = vpop.f32.mrf.mxu3 }
 0x128   : > { %v463_v49 = vadd.f32 %v1150_v21, %v462_v48  ;;  %v582_v50 = vadd.f32 %v581_v41, %v469_v47 }
 0x12a   : > { %v576_v51 = vadd.f32 %v575_v19, %v463_v49  ;;  %v615_v52 = vmax.f32 %v582_v50, 0.0 }
 0x12c   : > { %v613_v53 = vmax.f32 %v576_v51, 0.0  ;;  %647 = vst [vmem:[%s1156_s7 + $0xf8] sm:$0xff] %v615_v52 }
 0x12e   : > { %645 = vst [vmem:[%s1156_s7 + $0xe8] sm:$0xff] %v613_v53 }
 0x12f   : > { %v465_v28 = vpop.f32.mrf.mxu2 }
 0x130   : > { %v466_v54 = vadd.f32 %v1150_v21, %v465_v28 }
 0x132   : > { %v579_v55 = vadd.f32 %v578_v35, %v466_v54 }
 0x134   : > { %v614_v56 = vmax.f32 %v579_v55, 0.0 }
 0x136   : > { %646 = vst [vmem:[%s1156_s7 + $0xf0] sm:$0xff] %v614_v56 }
 0x137   : > { %876 = shalt.err (!%p873_p3)
}
 0x138   : > { %s913_s30 = smov 128   ;;  %s914_s4 = smov 8  }
 0x139   : > { %807 = dma.vmem_to_hbm [thread:$0]  (%p973_p5), %s662_s11, 4096, %s664_s17, %s649_s16, %s913_s30, %s913_s30, %s914_s4  }
 0x13a PF: > { %p813_p4 = scmp.ge.s32.totalorder %s911_s15, 2  ;;  %s678_s5 = sand.u32 1, %s899_s12  }
 0x13b   : > { %s679_s6 = scalar_lea.sflag [#allocation3], %s678_s5 }
 0x13c   : > { %p810_p7 = pnand %p813_p4, %p977_p6 }
 0x13e   : > { %p811_p8 = pneg %p810_p7 }
 0x140   : > { %894 = dma.done.wait (%p811_p8), %s679_s6, 4096  }
 0x141   : > { %896 = vsyncadd (%p811_p8), %s679_s6, 4294963200  ;;  %p13_p9 = scmp.ge.s32.totalorder %s960_s18, 4   ;;  %s1273_s12 = smov %s903_s13 }
 0x142   : > { %s1274_s13 = smov %s907_s14  ;;  %s1275_s14 = smov %s971_s21 }
 0x143   : > { %s1276_s15 = smov %s960_s18  ;;  %15 = sbr.rel (!%p13_p9) target bundleno = 3 (0x3), region = 67 }
 0x148   :  { %685 = vsyncpa [#allocation3], 1 }
 0x149   :  { %687 = vsyncpa [#allocation3 + $0x1], 1 }

</bundles_post_ra>
